<compile_context>
chip_gen: v7x
topology: tpu7x:2x2x1
jax: 0.10.0
libtpu: 0.0.40
codegen_flags: <defaults>
</compile_context>

<pallas_src>
import jax
import jax.numpy as jnp
from jax import lax
from jax.experimental import pallas as pl
from jax.experimental.pallas import tpu as pltpu


# ----------------------------------------------------------------------------
# SpatialSoftmax Pallas kernel
# ----------------------------------------------------------------------------

def _spatial_softmax_kernel(x_ref, xc_ref, yc_ref, o_ref):
    # x_ref:  (TILE_ROWS, HW) f32 flattened feature maps (one row per (n, c))
    # xc_ref: (1, HW) f32 constant, x-coordinate grid already divided by W
    # yc_ref: (1, HW) f32 constant, y-coordinate grid already divided by H
    # o_ref:  (TILE_ROWS, 2) f32 — column 0 = E[x]/W, column 1 = E[y]/H
    x = x_ref[...]

    # Numerically stable, *unnormalized* softmax over the spatial axis.
    m = jnp.max(x, axis=1, keepdims=True)
    e = jnp.exp(x - m)

    denom = jnp.sum(e, axis=1, keepdims=True)            # (T, 1)
    inv = pl.reciprocal(denom, approx=False)             # tiny (T,1) op; exact

    # Deferred normalization: weighted sums of e, normalized once per row.
    sx = jnp.sum(e * xc_ref[...], axis=1, keepdims=True)  # (T, 1)
    sy = jnp.sum(e * yc_ref[...], axis=1, keepdims=True)  # (T, 1)

    o_ref[:, 0] = (sx * inv)[:, 0]
    o_ref[:, 1] = (sy * inv)[:, 0]


def _round_up(x: int, m: int) -> int:
    return ((x + m - 1) // m) * m


def _choose_tile_rows(rows: int, hw: int) -> int:
    # ~4 MiB of input per block; with double buffering that is ~8 MiB, far
    # below the 32 MiB default scoped VMEM limit and v7x's 64 MiB physical VMEM.
    vmem_budget_bytes = 4 * 1024 * 1024
    by_vmem = max(8, vmem_budget_bytes // (hw * 4))
    tile = min(512, by_vmem, _round_up(rows, 8))
    return max(8, (tile // 8) * 8)


def spatial_softmax(ins: jax.Array) -> jax.Array:
    """SpatialSoftmax: (N, C, H, W) f32 -> (N, 2*C) f32 = cat(E[x]/W, E[y]/H)."""
    n, c, h, w = ins.shape
    rows, hw = n * c, h * w
    x_flat = ins.reshape(rows, hw).astype(jnp.float32)

    tile_rows = _choose_tile_rows(rows, hw)
    rows_padded = _round_up(rows, tile_rows)
    if rows_padded != rows:
        # Zero-pad rows to a tile multiple (padded rows produce finite garbage
        # that is sliced off below) instead of one giant whole-array block.
        x_flat = jnp.pad(x_flat, ((0, rows_padded - rows), (0, 0)))

    # Hoisted coordinate grids, pre-normalized by W / H (compile-time constants).
    q = jnp.arange(hw, dtype=jnp.float32)
    xc = (jnp.mod(q, float(w)) / float(w)).reshape(1, hw)
    yc = (jnp.floor(q / float(w)) / float(h)).reshape(1, hw)

    grid = (rows_padded // tile_rows,)
    out = pl.pallas_call(
        _spatial_softmax_kernel,
        out_shape=jax.ShapeDtypeStruct((rows_padded, 2), jnp.float32),
        grid_spec=pltpu.PrefetchScalarGridSpec(
            num_scalar_prefetch=0,
            grid=grid,
            in_specs=[
                pl.BlockSpec((tile_rows, hw), lambda i: (i, 0)),
                pl.BlockSpec((1, hw), lambda i: (0, 0)),   # constant block
                pl.BlockSpec((1, hw), lambda i: (0, 0)),   # constant block
            ],
            out_specs=pl.BlockSpec((tile_rows, 2), lambda i: (i, 0)),
        ),
        compiler_params=pltpu.CompilerParams(
            dimension_semantics=("parallel",),   # shard rows across TCs (v7x)
        ),
    )(x_flat, xc, yc)

    expected_xs = out[:rows, 0].reshape(n, c)
    expected_ys = out[:rows, 1].reshape(n, c)
    return jnp.concatenate((expected_xs, expected_ys), axis=1)


# ----------------------------------------------------------------------------
# Fused 3-layer MLP head as a single-block Pallas kernel
# ----------------------------------------------------------------------------

def _mlp_kernel(x_ref, w1_ref, b1_ref, w2_ref, b2_ref, w3_ref, b3_ref, o_ref):
    h1 = jnp.maximum(
        jnp.dot(x_ref[...], w1_ref[...], preferred_element_type=jnp.float32)
        + b1_ref[...], 0.0)
    h2 = jnp.maximum(
        jnp.dot(h1, w2_ref[...], preferred_element_type=jnp.float32)
        + b2_ref[...], 0.0)
    o_ref[...] = (
        jnp.dot(h2, w3_ref[...], preferred_element_type=jnp.float32) + b3_ref[...])


def mlp_forward(x, w1, b1, w2, b2, w3, b3):
    # Everything is tiny (<= 40 wide); a single full-array VMEM block suffices.
    return pl.pallas_call(
        _mlp_kernel,
        out_shape=jax.ShapeDtypeStruct((x.shape[0], w3.shape[1]), jnp.float32),
    )(x, w1, b1, w2, b2, w3, b3)


# ----------------------------------------------------------------------------
# LevineNet forward
# ----------------------------------------------------------------------------

def _conv2d_relu(x, w, b, stride):
    # TODO(synk): conv1-3 stay on XLA's conv; a Pallas im2col+matmul conv is not
    # a clean win at these 7x7/5x5, <=64-channel shapes.
    out = lax.conv_general_dilated(
        x, w, window_strides=(stride, stride), padding="VALID",
        dimension_numbers=("NCHW", "OIHW", "NCHW"),
        precision=lax.Precision.HIGHEST)
    return jnp.maximum(out + b.reshape(1, -1, 1, 1), 0.0)


def init_levine_params(key, joint_dim):
    ks = jax.random.split(key, 12)
    def rnd(k, shape, scale):
        return (scale * jax.random.normal(k, shape, jnp.float32)).astype(jnp.float32)
    return {
        "conv1_w": rnd(ks[0], (64, 3, 7, 7), 0.05), "conv1_b": rnd(ks[1], (64,), 0.05),
        "conv2_w": rnd(ks[2], (32, 64, 5, 5), 0.05), "conv2_b": rnd(ks[3], (32,), 0.05),
        "conv3_w": rnd(ks[4], (16, 32, 5, 5), 0.05), "conv3_b": rnd(ks[5], (16,), 0.05),
        "w1": rnd(ks[6], (16 * 2 + joint_dim, 40), 0.2), "b1": rnd(ks[7], (1, 40), 0.2),
        "w2": rnd(ks[8], (40, 40), 0.2), "b2": rnd(ks[9], (1, 40), 0.2),
        "w3": rnd(ks[10], (40, joint_dim), 0.2), "b3": rnd(ks[11], (1, joint_dim), 0.2),
    }


def levine_net_forward(params, img_ins, pose_ins):
    c1 = _conv2d_relu(img_ins, params["conv1_w"], params["conv1_b"], 2)
    c2 = _conv2d_relu(c1, params["conv2_w"], params["conv2_b"], 1)
    c3 = _conv2d_relu(c2, params["conv3_w"], params["conv3_b"], 1)
    feature_points = spatial_softmax(c3)                       # Pallas kernel
    full_input = jnp.concatenate((feature_points, pose_ins), axis=1)
    return mlp_forward(full_input, params["w1"], params["b1"], params["w2"],
                       params["b2"], params["w3"], params["b3"])  # Pallas kernel


# ----------------------------------------------------------------------------
# Pure-JAX references
# ----------------------------------------------------------------------------

def _spatial_softmax_ref(ins):
    n, c, h, w = ins.shape
    x_inds = jnp.tile(jnp.arange(w, dtype=jnp.float32), (h, 1))
    y_inds = jnp.tile(jnp.arange(h, dtype=jnp.float32), (w, 1)).T
    sm = jax.nn.softmax(ins.reshape(n, c, -1), axis=2).reshape(n, c, h, w)
    ex = jnp.sum(sm * x_inds, axis=(2, 3)) / w
    ey = jnp.sum(sm * y_inds, axis=(2, 3)) / h
    return jnp.concatenate((ex, ey), axis=1)


def _mlp_ref(x, w1, b1, w2, b2, w3, b3):
    h1 = jnp.maximum(jnp.dot(x, w1, preferred_element_type=jnp.float32) + b1, 0.0)
    h2 = jnp.maximum(jnp.dot(h1, w2, preferred_element_type=jnp.float32) + b2, 0.0)
    return jnp.dot(h2, w3, preferred_element_type=jnp.float32) + b3


def _levine_ref(params, img_ins, pose_ins):
    c1 = _conv2d_relu(img_ins, params["conv1_w"], params["conv1_b"], 2)
    c2 = _conv2d_relu(c1, params["conv2_w"], params["conv2_b"], 1)
    c3 = _conv2d_relu(c2, params["conv3_w"], params["conv3_b"], 1)
    feats = _spatial_softmax_ref(c3)
    full = jnp.concatenate((feats, pose_ins), axis=1)
    return _mlp_ref(full, params["w1"], params["b1"], params["w2"],
                    params["b2"], params["w3"], params["b3"])


# ----------------------------------------------------------------------------

if __name__ == "__main__":
    key = jax.random.PRNGKey(0)
    k_sm, k_params, k_img, k_pose = jax.random.split(key, 4)

    # 1) Standalone SpatialSoftmax kernel check (pure VPU/XLU math -> tight tol).
    sm_in = jax.random.normal(k_sm, (2, 4, 16, 16), dtype=jnp.float32)
    sm_out = jax.block_until_ready(spatial_softmax(sm_in))
    sm_ref = jax.block_until_ready(_spatial_softmax_ref(sm_in))
    assert sm_out.shape == (2, 8), sm_out.shape
    assert jnp.allclose(sm_out, sm_ref, atol=1e-5, rtol=1e-5), (
        f"spatial softmax max err {float(jnp.max(jnp.abs(sm_out - sm_ref)))}")

    # 2) Full LevineNet forward: 32x32 RGB image, joint_dim=7 (conv out = 5x5x16).
    image_h = image_w = 32
    joint_dim = 7
    params = init_levine_params(k_params, joint_dim)
    img = jax.random.normal(k_img, (2, 3, image_h, image_w), dtype=jnp.float32)
    pose = jax.random.normal(k_pose, (2, joint_dim), dtype=jnp.float32)

    out = jax.block_until_ready(levine_net_forward(params, img, pose))
    ref = jax.block_until_ready(_levine_ref(params, img, pose))
    assert out.shape == (2, joint_dim), out.shape
    # Loose tolerance only to cover possible Mosaic-vs-XLA f32 MXU pass
    # differences in the tiny MLP head; typical observed error is ~1e-6.
    assert jnp.allclose(out, ref, atol=1e-2, rtol=1e-2), (
        f"levine net max err {float(jnp.max(jnp.abs(out - ref)))}")

    print("KERNEL_OK")
</pallas_src>

<mosaic_0001>
module attributes {stable_mosaic.version = 11 : i64} {
  func.func @_spatial_softmax_kernel(%arg0: i32, %arg1: memref<8x256xf32, #tpu.memory_space<vmem>>, %arg2: memref<1x256xf32, #tpu.memory_space<vmem>>, %arg3: memref<1x256xf32, #tpu.memory_space<vmem>>, %arg4: memref<8x2xf32, #tpu.memory_space<vmem>>) attributes {dimension_semantics = [#tpu.dimension_semantics<parallel>], iteration_bounds = array<i64: 1>, scalar_prefetch = 0 : i64, scratch_operands = 0 : i64, tpu.core_type = #tpu.core_type<tc>, window_params = [{transform_indices = @transform_0, window_bounds = array<i64: 8, 256>}, {pipeline_mode = #tpu.pipeline_mode<synchronous>, transform_indices = @transform_1, window_bounds = array<i64: 1, 256>}, {pipeline_mode = #tpu.pipeline_mode<synchronous>, transform_indices = @transform_2, window_bounds = array<i64: 1, 256>}, {transform_indices = @transform_3, window_bounds = array<i64: 8, 2>}]} {
    %c0 = arith.constant 0 : index
    %c0_0 = arith.constant 0 : index
    %0 = vector.load %arg1[%c0, %c0_0] : memref<8x256xf32, #tpu.memory_space<vmem>>, vector<8x256xf32>
    %cst = arith.constant dense<0xFF800000> : vector<8xf32>
    %1 = vector.multi_reduction <maximumf>, %0, %cst [1] : vector<8x256xf32> to vector<8xf32>
    %2 = vector.shape_cast %1 : vector<8xf32> to vector<8x1xf32>
    %3 = vector.broadcast %2 : vector<8x1xf32> to vector<8x256xf32>
    %4 = arith.subf %0, %3 : vector<8x256xf32>
    %5 = math.exp %4 : vector<8x256xf32>
    %cst_1 = arith.constant dense<0.000000e+00> : vector<8xf32>
    %6 = vector.multi_reduction <add>, %5, %cst_1 [1] : vector<8x256xf32> to vector<8xf32>
    %7 = vector.shape_cast %6 : vector<8xf32> to vector<8x1xf32>
    %8 = tpu.reciprocal %7 : vector<8x1xf32> -> vector<8x1xf32>
    %c0_2 = arith.constant 0 : index
    %c0_3 = arith.constant 0 : index
    %9 = vector.load %arg2[%c0_2, %c0_3] : memref<1x256xf32, #tpu.memory_space<vmem>>, vector<1x256xf32>
    %10 = vector.broadcast %9 : vector<1x256xf32> to vector<8x256xf32>
    %11 = arith.mulf %5, %10 : vector<8x256xf32>
    %cst_4 = arith.constant dense<0.000000e+00> : vector<8xf32>
    %12 = vector.multi_reduction <add>, %11, %cst_4 [1] : vector<8x256xf32> to vector<8xf32>
    %13 = vector.shape_cast %12 : vector<8xf32> to vector<8x1xf32>
    %c0_5 = arith.constant 0 : index
    %c0_6 = arith.constant 0 : index
    %14 = vector.load %arg3[%c0_5, %c0_6] : memref<1x256xf32, #tpu.memory_space<vmem>>, vector<1x256xf32>
    %15 = vector.broadcast %14 : vector<1x256xf32> to vector<8x256xf32>
    %16 = arith.mulf %5, %15 : vector<8x256xf32>
    %cst_7 = arith.constant dense<0.000000e+00> : vector<8xf32>
    %17 = vector.multi_reduction <add>, %16, %cst_7 [1] : vector<8x256xf32> to vector<8xf32>
    %18 = vector.shape_cast %17 : vector<8xf32> to vector<8x1xf32>
    %19 = arith.mulf %13, %8 : vector<8x1xf32>
    %20 = vector.shape_cast %19 : vector<8x1xf32> to vector<8xf32>
    %c0_8 = arith.constant 0 : index
    %c0_9 = arith.constant 0 : index
    %21 = vector.load %arg4[%c0_8, %c0_9] : memref<8x2xf32, #tpu.memory_space<vmem>>, vector<8x1xf32>
    %22 = vector.shape_cast %21 : vector<8x1xf32> to vector<8xf32>
    %23 = vector.shape_cast %20 : vector<8xf32> to vector<8x1xf32>
    tpu.vector_store %arg4[%c0_8, %c0_9], %23 {strides = array<i32>} : memref<8x2xf32, #tpu.memory_space<vmem>>, vector<8x1xf32>,
    %24 = arith.mulf %18, %8 : vector<8x1xf32>
    %25 = vector.shape_cast %24 : vector<8x1xf32> to vector<8xf32>
    %c0_10 = arith.constant 0 : index
    %c1 = arith.constant 1 : index
    %26 = vector.load %arg4[%c0_10, %c1] : memref<8x2xf32, #tpu.memory_space<vmem>>, vector<8x1xf32>
    %27 = vector.shape_cast %26 : vector<8x1xf32> to vector<8xf32>
    %28 = vector.shape_cast %25 : vector<8xf32> to vector<8x1xf32>
    tpu.vector_store %arg4[%c0_10, %c1], %28 {strides = array<i32>} : memref<8x2xf32, #tpu.memory_space<vmem>>, vector<8x1xf32>,
    return
  }
  func.func @transform_0(%arg0: i32) -> (i32, i32) {
    %c0_i32 = arith.constant 0 : i32
    %c0_i32_0 = arith.constant 0 : i32
    return %arg0, %c0_i32 : i32, i32
  }
  func.func @transform_1(%arg0: i32) -> (i32, i32) {
    %c0_i32 = arith.constant 0 : i32
    %c0_i32_0 = arith.constant 0 : i32
    %c0_i32_1 = arith.constant 0 : i32
    return %c0_i32, %c0_i32_0 : i32, i32
  }
  func.func @transform_2(%arg0: i32) -> (i32, i32) {
    %c0_i32 = arith.constant 0 : i32
    %c0_i32_0 = arith.constant 0 : i32
    %c0_i32_1 = arith.constant 0 : i32
    return %c0_i32, %c0_i32_0 : i32, i32
  }
  func.func @transform_3(%arg0: i32) -> (i32, i32) {
    %c0_i32 = arith.constant 0 : i32
    %c0_i32_0 = arith.constant 0 : i32
    return %arg0, %c0_i32 : i32, i32
  }
}

</mosaic_0001>

<bundles_post_ra>
// kernel: tpu_custom_call.1
= control target key start
LH: loop header
LB: loop body
LE: loop exit
PB: predicated region body
PF: predicated region fallthrough
CT: control target
= control target key end

     0   :  { %8 = vsyncpa [#allocation3], 0  ;;  %s117_s12 = smov [#allocation2]   ;;  %s162_s0 = inlined_call_operand.hbm [shape: f32[8,256], index: 0, kind: input, shape index: {}]   ;;  %s163_s1 = inlined_call_operand.vmem [shape: f32[1,256], index: 1, kind: input, shape index: {}]   ;;  %s164_s2 = inlined_call_operand.vmem [shape: f32[1,256], index: 2, kind: input, shape index: {}]   ;;  %s165_s3 = inlined_call_operand.vmem [shape: f32[8,2], index: 3, kind: output, shape index: {}]  }
   0x1   :  { %s15_s13 = sshll.u32 %s117_s12, 4  ;;  %s93_s16 = scalar_lea.hbm %s162_s0, 256  ;;  %s16_s13 = int_to_ptr.vmem [resolvable:$true] %s15_s13 }
   0x2   :  { %p94_p0 = scmp.ne.s32.totalorder %s162_s0, %s93_s16  ;;  %p97_p1 = scmp.lt.u32.totalorder %s93_s16, %s162_s0 }
   0x4   :  { %p99_p2 = pnand %p97_p1, %p94_p0 }
   0x6   :  { %102 = shalt.err (!%p99_p2)
}
   0x7   :  { %s103_s21 = scalar_lea.vmem %s16_s13, 256  ;;  %p108_p4 = scmp.lt.s32.totalorder %s16_s13, %s16_s13 }
   0x8   :  { %p104_p3 = scmp.ne.s32.totalorder %s16_s13, %s103_s21  ;;  %p109_p5 = scmp.lt.s32.totalorder %s103_s21, %s103_s21 }
   0xa   :  { %p110_p6 = por %p109_p5, %p108_p4 }
   0xc   :  { %p111_p7 = pnand %p110_p6, %p104_p3 }
   0xe   :  { %114 = shalt.err (!%p111_p7)
}
   0xf   :  { %18 = dma.hbm_to_vmem [thread:$0]  %s162_s0, 256, %s16_s13, [#allocation3]  }
  0x10   :  { %115 = dma.done.wait [#allocation3], 256  }
  0x11   :  { %116 = vsyncadd [#allocation3], 4294967040  ;;  %v26_v0 = vld [vmem:[#allocation2] sm:$0xff]  ;;  %v27_v1 = vld [vmem:[#allocation2 + $0x8] sm:$0xff]  ;;  %v43_v4 = vlaneseq  ;;  %vm76_vm0 = vcmask 7168   ;;  %vm79_vm1 = vcmask 15368  }
  0x12   :  { %v28_v2 = vmax.f32 %v26_v0, %v27_v1  ;;  %v41_v11 = vld [vmem:[%s163_s1] sm:$0x3] }
  0x13   :  { %v44_v9 = vshrl.u32 %v43_v4, 7  ;;  %v58_v14 = vld [vmem:[%s164_s2] sm:$0x3] }
  0x14   :  { %29 = vmax.xlane.f32.xlu0 %v28_v2 }
  0x15   :  { %v45_v10 = vsub.s32 0, %v44_v9  ;;  %v49_v12 = vsub.s32 1, %v44_v9 }
  0x17   :  { %v46_v13 = vrot.slane %v41_v11, %v45_v10  ;;  %v50_v15 = vrot.slane %v41_v11, %v49_v12  ;;  %v63_v17 = vrot.slane %v58_v14, %v45_v10  ;;  %v67_v18 = vrot.slane %v58_v14, %v49_v12 }
  0xa1   :  { %v30_v3 = vpop.xlane.xlu0 %29 }
  0xa2   :  { %v31_v5 = vsub.f32 %v26_v0, %v30_v3  ;;  %v32_v6 = vsub.f32 %v27_v1, %v30_v3 }
  0xa4   :  { %v33_v7 = vmul.f32 1.442695, %v31_v5  ;;  %v35_v8 = vmul.f32 1.442695, %v32_v6 }
  0xa6   :  { %87 = vpow2.f32 %v33_v7 }
  0xa7   :  { %89 = vpow2.f32 %v35_v8 }
  0xb0   :  { %v88_v16 = vpop.eup %87 }
  0xb1   :  { %v90_v19 = vpop.eup %89  ;;  %v53_v20 = vmul.f32 %v88_v16, %v46_v13  ;;  %v70_v24 = vmul.f32 %v88_v16, %v63_v17 }
  0xb2   :  { %v37_v21 = vadd.f32 %v90_v19, %v88_v16  ;;  %v54_v22 = vmul.f32 %v90_v19, %v50_v15  ;;  %v71_v25 = vmul.f32 %v90_v19, %v67_v18 }
  0xb4   :  { %38 = vadd.xlane.f32.xlu0 %v37_v21  ;;  %v55_v23 = vadd.f32 %v54_v22, %v53_v20  ;;  %v72_v26 = vadd.f32 %v71_v25, %v70_v24 }
  0xb6   :  { %56 = vadd.xlane.f32.xlu1 %v55_v23 }
  0xba   :  { %73 = vadd.xlane.f32.xlu1 %v72_v26 }
 0x141   :  { %v39_v27 = vpop.xlane.xlu0 %38 }
 0x142   :  { %91 = vrcp.f32 %v39_v27 }
 0x143   :  { %v57_v28 = vpop.xlane.xlu1 %56 }
 0x147   :  { %v74_v30 = vpop.xlane.xlu1 %73 }
 0x14c   :  { %v92_v29 = vpop.eup %91 }
 0x14d   :  { %v75_v31 = vmul.f32 %v92_v29, %v57_v28  ;;  %v78_v32 = vmul.f32 %v92_v29, %v74_v30 }
 0x14f   :  { %77 = vst.msk [vmem:[%s165_s3] sm:$0xff] %vm76_vm0, %v75_v31 }
 0x150   :  { %80 = vst.msk [vmem:[%s165_s3] sm:$0xff] %vm79_vm1, %v78_v32 }
 0x151   :  { %85 = vsyncpa [#allocation3], 1 }

</bundles_post_ra>
